<compile_context>
chip_gen: v7x
topology: tpu7x:2x2x1
jax: 0.10.0
libtpu: 0.0.40
codegen_flags: <defaults>
</compile_context>

<pallas_src>
import jax
import jax.numpy as jnp
from jax import lax
from jax.experimental import pallas as pl
from jax.experimental.pallas import tpu as pltpu

LANES = 128
SUBLANES = 8
TARGET_BLOCK_BYTES = 8 << 20   # combined (both inputs) block bytes per grid step


def _round_up(a, b):
    return ((a + b - 1) // b) * b


def _sublane_multiple(dtype):
    # second-to-last block dim multiple: 8 (4-byte), 16 (2-byte), 32 (1-byte)
    return {4: 8, 2: 16, 1: 32}.get(jnp.dtype(dtype).itemsize, 8)


def _num_tensorcores():
    # v7x has 2 TensorCores per chip; v5e / v6e have 1.
    try:
        kind = jax.devices()[0].device_kind.lower()
    except Exception:
        return 1
    return 2 if "v7" in kind else 1


def _make_dice_kernel(rows, tile_rows, blocks_per_core, chunk, unroll, needs_mask):
    """Build the per-grid-step kernel with all sizes baked in as constants."""
    num_chunks = tile_rows // chunk

    def kernel(yp_ref, yt_ref, out_ref, acc_tp, acc_tt, acc_pp):
        j = pl.program_id(1)  # reduction axis ("arbitrary")

        @pl.when(j == 0)
        def _init():
            acc_tp[...] = jnp.zeros_like(acc_tp)
            acc_tt[...] = jnp.zeros_like(acc_tt)
            acc_pp[...] = jnp.zeros_like(acc_pp)

        # Unclamped linear block index -> number of valid rows in this block.
        block_lin = pl.program_id(0) * blocks_per_core + j
        valid = jnp.clip(rows - block_lin * tile_rows, 0, tile_rows)

        def accumulate(masked):
            def chunk_body(c, carry):
                tp, tt, pp = carry
                r0 = pl.multiple_of(c * chunk, chunk)
                yp = yp_ref[pl.ds(r0, chunk), :].astype(jnp.float32)
                yt = yt_ref[pl.ds(r0, chunk), :].astype(jnp.float32)
                if masked:
                    ridx = lax.broadcasted_iota(jnp.int32, (chunk, LANES), 0)
                    keep = ridx < (valid - r0)
                    yp = jnp.where(keep, yp, 0.0)
                    yt = jnp.where(keep, yt, 0.0)

                # Products stay in-register (chunk is small) and are partially
                # reduced to a single (8, 128) vreg per term (VPU-only adds).
                def partial(x):
                    return jnp.sum(x.reshape(-1, SUBLANES, LANES), axis=0)

                return (tp + partial(yt * yp),
                        tt + partial(yt * yt),
                        pp + partial(yp * yp))

            zero = jnp.zeros((SUBLANES, LANES), jnp.float32)
            tp, tt, pp = lax.fori_loop(0, num_chunks, chunk_body,
                                       (zero, zero, zero), unroll=unroll)
            acc_tp[...] += tp
            acc_tt[...] += tt
            acc_pp[...] += pp

        if needs_mask:
            # Only the last (partial) block pays for masking; full blocks take
            # the unmasked fast path.
            @pl.when(valid >= tile_rows)
            def _full():
                accumulate(False)

            @pl.when(valid < tile_rows)
            def _partial():
                accumulate(True)
        else:
            accumulate(False)

        @pl.when(j == pl.num_programs(1) - 1)
        def _finalize():
            # Single sublane reduce per term, stored row-by-row (no concat).
            out_ref[0, 0:1, :] = jnp.sum(acc_tp[...], axis=0, keepdims=True)
            out_ref[0, 1:2, :] = jnp.sum(acc_tt[...], axis=0, keepdims=True)
            out_ref[0, 2:3, :] = jnp.sum(acc_pp[...], axis=0, keepdims=True)

    return kernel


def soft_dice_loss(y_pred, y_true, epsilon=1e-5):
    assert y_pred.shape == y_true.shape
    n = y_pred.size
    p_item = jnp.dtype(y_pred.dtype).itemsize
    t_item = jnp.dtype(y_true.dtype).itemsize
    mult = max(_sublane_multiple(y_pred.dtype), _sublane_multiple(y_true.dtype))
    num_cores = _num_tensorcores()

    rows = pl.cdiv(n, LANES)

    # Lane-dense (rows, 128) view.  Free bitcast when n is a multiple of 128;
    # otherwise pad only the sub-128 lane remainder (zero padding is
    # sum-neutral for all three terms).
    def prep(x):
        flat = jnp.ravel(x)
        if rows * LANES != n:
            flat = jnp.pad(flat, (0, rows * LANES - n))
        return flat.reshape(rows, LANES)

    yp2d = prep(y_pred)
    yt2d = prep(y_true)

    # Tile size from a VMEM byte budget: ~8 MiB of input blocks per grid step
    # (16 MiB double-buffered for two inputs) — amortizes the ~0.35 us/step
    # pipeline overhead on every generation and stays under v7x's 64 MiB VMEM.
    bytes_per_row = LANES * (p_item + t_item)
    budget_rows = max(64, (TARGET_BLOCK_BYTES // bytes_per_row) // 64 * 64)
    rows_per_core = pl.cdiv(rows, num_cores)
    tile_rows = min(budget_rows, _round_up(rows_per_core, mult))
    blocks_per_core = pl.cdiv(rows_per_core, tile_rows)

    covered = num_cores * blocks_per_core * tile_rows
    needs_mask = covered != rows
    num_valid_blocks = pl.cdiv(rows, tile_rows)   # blocks containing real data

    # Inner row-group size: largest of {64,32,16,8} dividing tile_rows (always
    # >= the dtype sublane multiple, so dynamic slices stay aligned).
    chunk = max(c for c in (64, 32, 16, 8) if tile_rows % c == 0)
    num_chunks = tile_rows // chunk
    unroll = min(4, num_chunks)

    # Clamp the block index only when the 2-core split overhangs the data, so
    # no DMA ever starts fully out of bounds (its rows are masked to zero).
    if num_cores * blocks_per_core > num_valid_blocks:
        in_map = lambda i, j: (jnp.minimum(i * blocks_per_core + j,
                                           num_valid_blocks - 1), 0)
    else:
        in_map = lambda i, j: (i * blocks_per_core + j, 0)

    kernel = _make_dice_kernel(rows, tile_rows, blocks_per_core, chunk,
                               unroll, needs_mask)

    block_bytes = tile_rows * LANES * (p_item + t_item)
    vmem_limit = int(min(max(3 * block_bytes + (2 << 20), 16 << 20), 60 << 20))

    if num_cores > 1 and hasattr(pltpu, "CORE_PARALLEL") and hasattr(pltpu, "ARBITRARY"):
        dim_sem = (pltpu.CORE_PARALLEL, pltpu.ARBITRARY)   # real 2-TC split on v7x
    elif num_cores > 1:
        dim_sem = ("parallel", "arbitrary")
    else:
        dim_sem = ("arbitrary", "arbitrary")

    cost = pl.CostEstimate(
        flops=6 * n,                # 3 muls + 3 adds per element
        transcendentals=0,
        bytes_accessed=n * (p_item + t_item) + num_cores * 3 * LANES * 4,
    )

    partials = pl.pallas_call(
        kernel,
        out_shape=jax.ShapeDtypeStruct((num_cores, 3, LANES), jnp.float32),
        grid_spec=pltpu.PrefetchScalarGridSpec(
            num_scalar_prefetch=0,
            grid=(num_cores, blocks_per_core),
            in_specs=[
                pl.BlockSpec((tile_rows, LANES), in_map),
                pl.BlockSpec((tile_rows, LANES), in_map),
            ],
            out_specs=pl.BlockSpec((1, 3, LANES), lambda i, j: (i, 0, 0)),
            scratch_shapes=[
                pltpu.VMEM((SUBLANES, LANES), jnp.float32),
                pltpu.VMEM((SUBLANES, LANES), jnp.float32),
                pltpu.VMEM((SUBLANES, LANES), jnp.float32),
            ],
        ),
        compiler_params=pltpu.CompilerParams(
            dimension_semantics=dim_sem,
            vmem_limit_bytes=vmem_limit,
        ),
        cost_estimate=cost,
    )(yp2d, yt2d)

    # Tiny cross-core + cross-lane combine and the scalar math in the wrapper.
    sums = jnp.sum(partials, axis=(0, 2))  # (3,): [sum(yt*yp), sum(yt^2), sum(yp^2)]
    numerator = 2.0 * sums[0]
    denominator = sums[1] + sums[2]
    return 1.0 - (numerator + epsilon) / (denominator + epsilon)


def soft_dice_loss_ref(y_pred, y_true, epsilon=1e-5):
    yp = y_pred.astype(jnp.float32)
    yt = y_true.astype(jnp.float32)
    num = 2.0 * jnp.sum(yt * yp)
    den = jnp.sum(yt * yt) + jnp.sum(yp * yp)
    return 1.0 - (num + epsilon) / (den + epsilon)


if __name__ == "__main__":
    key = jax.random.PRNGKey(0)
    k1, k2 = jax.random.split(key)
    # NCHW: batch=2, channels=4, spatial=16x16
    y_pred = jax.nn.sigmoid(jax.random.normal(k1, (2, 4, 16, 16), jnp.float32))
    y_true = (jax.random.uniform(k2, (2, 4, 16, 16)) > 0.5).astype(jnp.float32)

    loss = jax.block_until_ready(soft_dice_loss(y_pred, y_true))
    ref = soft_dice_loss_ref(y_pred, y_true)
    # Relaxed tolerance: f32 accumulation order differs from jnp.sum.
    assert jnp.allclose(loss, ref, atol=1e-5, rtol=1e-4), (loss, ref)
    print("KERNEL_OK")
</pallas_src>

<mosaic_0001>
module attributes {stable_mosaic.version = 11 : i64} {
  func.func @kernel(%arg0: i32, %arg1: i32, %arg2: memref<16x128xf32, #tpu.memory_space<vmem>>, %arg3: memref<16x128xf32, #tpu.memory_space<vmem>>, %arg4: memref<1x3x128xf32, #tpu.memory_space<vmem>>, %arg5: memref<8x128xf32, #tpu.memory_space<vmem>>, %arg6: memref<8x128xf32, #tpu.memory_space<vmem>>, %arg7: memref<8x128xf32, #tpu.memory_space<vmem>>) attributes {dimension_semantics = [#tpu.dimension_semantics<arbitrary>, #tpu.dimension_semantics<arbitrary>], iteration_bounds = array<i64: 1, 1>, scalar_prefetch = 0 : i64, scratch_operands = 3 : i64, tpu.core_type = #tpu.core_type<tc>, window_params = [{transform_indices = @transform_0, window_bounds = array<i64: 16, 128>}, {transform_indices = @transform_1, window_bounds = array<i64: 16, 128>}, {transform_indices = @transform_2, window_bounds = array<i64: 1, 3, 128>}]} {
    %c0_i32 = arith.constant 0 : i32
    %0 = arith.cmpi eq, %arg1, %c0_i32 : i32
    %1 = arith.extui %0 : i1 to i32
    %c0_i32_0 = arith.constant 0 : i32
    %2 = arith.cmpi ne, %1, %c0_i32_0 : i32
    scf.if %2 {
      %cst_20 = arith.constant 0.000000e+00 : f32
      %34 = vector.broadcast %cst_20 : f32 to vector<8x128xf32>
      %c0_21 = arith.constant 0 : index
      %c0_22 = arith.constant 0 : index
      %35 = vector.load %arg5[%c0_21, %c0_22] : memref<8x128xf32, #tpu.memory_space<vmem>>, vector<8x128xf32>
      tpu.vector_store %arg5[%c0_21, %c0_22], %34 {strides = array<i32>} : memref<8x128xf32, #tpu.memory_space<vmem>>, vector<8x128xf32>,
      %cst_23 = arith.constant 0.000000e+00 : f32
      %36 = vector.broadcast %cst_23 : f32 to vector<8x128xf32>
      %c0_24 = arith.constant 0 : index
      %c0_25 = arith.constant 0 : index
      %37 = vector.load %arg6[%c0_24, %c0_25] : memref<8x128xf32, #tpu.memory_space<vmem>>, vector<8x128xf32>
      tpu.vector_store %arg6[%c0_24, %c0_25], %36 {strides = array<i32>} : memref<8x128xf32, #tpu.memory_space<vmem>>, vector<8x128xf32>,
      %cst_26 = arith.constant 0.000000e+00 : f32
      %38 = vector.broadcast %cst_26 : f32 to vector<8x128xf32>
      %c0_27 = arith.constant 0 : index
      %c0_28 = arith.constant 0 : index
      %39 = vector.load %arg7[%c0_27, %c0_28] : memref<8x128xf32, #tpu.memory_space<vmem>>, vector<8x128xf32>
      tpu.vector_store %arg7[%c0_27, %c0_28], %38 {strides = array<i32>} : memref<8x128xf32, #tpu.memory_space<vmem>>, vector<8x128xf32>,
    } else {
    }
    %cst = arith.constant 0.000000e+00 : f32
    %3 = vector.broadcast %cst : f32 to vector<8x128xf32>
    %c0_i32_1 = arith.constant 0 : i32
    %c16_i32 = arith.constant 16 : i32
    %4 = arith.muli %c0_i32_1, %c16_i32 : i32
    %5 = tpu.assume_multiple %4, 16 : i32
    %6 = arith.index_cast %5 : i32 to index
    %c0 = arith.constant 0 : index
    %7 = vector.load %arg2[%6, %c0] : memref<16x128xf32, #tpu.memory_space<vmem>>, vector<16x128xf32>
    %8 = arith.index_cast %5 : i32 to index
    %c0_2 = arith.constant 0 : index
    %9 = vector.load %arg3[%8, %c0_2] : memref<16x128xf32, #tpu.memory_space<vmem>>, vector<16x128xf32>
    %10 = arith.mulf %9, %7 : vector<16x128xf32>
    %11 = vector.shape_cast %10 : vector<16x128xf32> to vector<2x8x128xf32>
    %cst_3 = arith.constant dense<0.000000e+00> : vector<8x128xf32>
    %12 = vector.multi_reduction <add>, %11, %cst_3 [0] : vector<2x8x128xf32> to vector<8x128xf32>
    %13 = arith.addf %3, %12 : vector<8x128xf32>
    %14 = arith.mulf %9, %9 : vector<16x128xf32>
    %15 = vector.shape_cast %14 : vector<16x128xf32> to vector<2x8x128xf32>
    %cst_4 = arith.constant dense<0.000000e+00> : vector<8x128xf32>
    %16 = vector.multi_reduction <add>, %15, %cst_4 [0] : vector<2x8x128xf32> to vector<8x128xf32>
    %17 = arith.addf %3, %16 : vector<8x128xf32>
    %18 = arith.mulf %7, %7 : vector<16x128xf32>
    %19 = vector.shape_cast %18 : vector<16x128xf32> to vector<2x8x128xf32>
    %cst_5 = arith.constant dense<0.000000e+00> : vector<8x128xf32>
    %20 = vector.multi_reduction <add>, %19, %cst_5 [0] : vector<2x8x128xf32> to vector<8x128xf32>
    %21 = arith.addf %3, %20 : vector<8x128xf32>
    %c1_i32 = arith.constant 1 : i32
    %c0_6 = arith.constant 0 : index
    %c0_7 = arith.constant 0 : index
    %22 = vector.load %arg5[%c0_6, %c0_7] : memref<8x128xf32, #tpu.memory_space<vmem>>, vector<8x128xf32>
    %23 = arith.addf %22, %13 : vector<8x128xf32>
    %c0_8 = arith.constant 0 : index
    %c0_9 = arith.constant 0 : index
    %24 = vector.load %arg5[%c0_8, %c0_9] : memref<8x128xf32, #tpu.memory_space<vmem>>, vector<8x128xf32>
    tpu.vector_store %arg5[%c0_8, %c0_9], %23 {strides = array<i32>} : memref<8x128xf32, #tpu.memory_space<vmem>>, vector<8x128xf32>,
    %c0_10 = arith.constant 0 : index
    %c0_11 = arith.constant 0 : index
    %25 = vector.load %arg6[%c0_10, %c0_11] : memref<8x128xf32, #tpu.memory_space<vmem>>, vector<8x128xf32>
    %26 = arith.addf %25, %17 : vector<8x128xf32>
    %c0_12 = arith.constant 0 : index
    %c0_13 = arith.constant 0 : index
    %27 = vector.load %arg6[%c0_12, %c0_13] : memref<8x128xf32, #tpu.memory_space<vmem>>, vector<8x128xf32>
    tpu.vector_store %arg6[%c0_12, %c0_13], %26 {strides = array<i32>} : memref<8x128xf32, #tpu.memory_space<vmem>>, vector<8x128xf32>,
    %c0_14 = arith.constant 0 : index
    %c0_15 = arith.constant 0 : index
    %28 = vector.load %arg7[%c0_14, %c0_15] : memref<8x128xf32, #tpu.memory_space<vmem>>, vector<8x128xf32>
    %29 = arith.addf %28, %21 : vector<8x128xf32>
    %c0_16 = arith.constant 0 : index
    %c0_17 = arith.constant 0 : index
    %30 = vector.load %arg7[%c0_16, %c0_17] : memref<8x128xf32, #tpu.memory_space<vmem>>, vector<8x128xf32>
    tpu.vector_store %arg7[%c0_16, %c0_17], %29 {strides = array<i32>} : memref<8x128xf32, #tpu.memory_space<vmem>>, vector<8x128xf32>,
    %c0_i32_18 = arith.constant 0 : i32
    %31 = arith.cmpi eq, %arg1, %c0_i32_18 : i32
    %32 = arith.extui %31 : i1 to i32
    %c0_i32_19 = arith.constant 0 : i32
    %33 = arith.cmpi ne, %32, %c0_i32_19 : i32
    scf.if %33 {
      %c0_20 = arith.constant 0 : index
      %c0_21 = arith.constant 0 : index
      %34 = vector.load %arg5[%c0_20, %c0_21] : memref<8x128xf32, #tpu.memory_space<vmem>>, vector<8x128xf32>
      %cst_22 = arith.constant dense<0.000000e+00> : vector<128xf32>
      %35 = vector.multi_reduction <add>, %34, %cst_22 [0] : vector<8x128xf32> to vector<128xf32>
      %36 = vector.shape_cast %35 : vector<128xf32> to vector<1x128xf32>
      %c0_23 = arith.constant 0 : index
      %c0_24 = arith.constant 0 : index
      %c0_25 = arith.constant 0 : index
      %37 = vector.load %arg4[%c0_23, %c0_24, %c0_25] : memref<1x3x128xf32, #tpu.memory_space<vmem>>, vector<1x1x128xf32>
      %38 = vector.shape_cast %37 : vector<1x1x128xf32> to vector<1x128xf32>
      %39 = vector.shape_cast %36 : vector<1x128xf32> to vector<1x1x128xf32>
      tpu.vector_store %arg4[%c0_23, %c0_24, %c0_25], %39 {strides = array<i32>} : memref<1x3x128xf32, #tpu.memory_space<vmem>>, vector<1x1x128xf32>,
      %c0_26 = arith.constant 0 : index
      %c0_27 = arith.constant 0 : index
      %40 = vector.load %arg6[%c0_26, %c0_27] : memref<8x128xf32, #tpu.memory_space<vmem>>, vector<8x128xf32>
      %cst_28 = arith.constant dense<0.000000e+00> : vector<128xf32>
      %41 = vector.multi_reduction <add>, %40, %cst_28 [0] : vector<8x128xf32> to vector<128xf32>
      %42 = vector.shape_cast %41 : vector<128xf32> to vector<1x128xf32>
      %c0_29 = arith.constant 0 : index
      %c1 = arith.constant 1 : index
      %c0_30 = arith.constant 0 : index
      %43 = vector.load %arg4[%c0_29, %c1, %c0_30] : memref<1x3x128xf32, #tpu.memory_space<vmem>>, vector<1x1x128xf32>
      %44 = vector.shape_cast %43 : vector<1x1x128xf32> to vector<1x128xf32>
      %45 = vector.shape_cast %42 : vector<1x128xf32> to vector<1x1x128xf32>
      tpu.vector_store %arg4[%c0_29, %c1, %c0_30], %45 {strides = array<i32>} : memref<1x3x128xf32, #tpu.memory_space<vmem>>, vector<1x1x128xf32>,
      %c0_31 = arith.constant 0 : index
      %c0_32 = arith.constant 0 : index
      %46 = vector.load %arg7[%c0_31, %c0_32] : memref<8x128xf32, #tpu.memory_space<vmem>>, vector<8x128xf32>
      %cst_33 = arith.constant dense<0.000000e+00> : vector<128xf32>
      %47 = vector.multi_reduction <add>, %46, %cst_33 [0] : vector<8x128xf32> to vector<128xf32>
      %48 = vector.shape_cast %47 : vector<128xf32> to vector<1x128xf32>
      %c0_34 = arith.constant 0 : index
      %c2 = arith.constant 2 : index
      %c0_35 = arith.constant 0 : index
      %49 = vector.load %arg4[%c0_34, %c2, %c0_35] : memref<1x3x128xf32, #tpu.memory_space<vmem>>, vector<1x1x128xf32>
      %50 = vector.shape_cast %49 : vector<1x1x128xf32> to vector<1x128xf32>
      %51 = vector.shape_cast %48 : vector<1x128xf32> to vector<1x1x128xf32>
      tpu.vector_store %arg4[%c0_34, %c2, %c0_35], %51 {strides = array<i32>} : memref<1x3x128xf32, #tpu.memory_space<vmem>>, vector<1x1x128xf32>,
    } else {
    }
    return
  }
  func.func @transform_0(%arg0: i32, %arg1: i32) -> (i32, i32) {
    %c1_i32 = arith.constant 1 : i32
    %0 = arith.muli %arg0, %c1_i32 : i32
    %1 = arith.addi %0, %arg1 : i32
    %c0_i32 = arith.constant 0 : i32
    %c0_i32_0 = arith.constant 0 : i32
    return %1, %c0_i32 : i32, i32
  }
  func.func @transform_1(%arg0: i32, %arg1: i32) -> (i32, i32) {
    %c1_i32 = arith.constant 1 : i32
    %0 = arith.muli %arg0, %c1_i32 : i32
    %1 = arith.addi %0, %arg1 : i32
    %c0_i32 = arith.constant 0 : i32
    %c0_i32_0 = arith.constant 0 : i32
    return %1, %c0_i32 : i32, i32
  }
  func.func @transform_2(%arg0: i32, %arg1: i32) -> (i32, i32, i32) {
    %c0_i32 = arith.constant 0 : i32
    %c0_i32_0 = arith.constant 0 : i32
    %c0_i32_1 = arith.constant 0 : i32
    return %arg0, %c0_i32, %c0_i32_0 : i32, i32, i32
  }
}

</mosaic_0001>

<bundles_post_ra>
// kernel: tpu_custom_call.1
= control target key start
LH: loop header
LB: loop body
LE: loop exit
PB: predicated region body
PF: predicated region fallthrough
CT: control target
= control target key end

     0   :  { %7 = vsyncpa [#allocation6], 0  ;;  %s220_s0 = inlined_call_operand.hbm [shape: f32[16,128], index: 0, kind: input, shape index: {}]   ;;  %s221_s1 = inlined_call_operand.hbm [shape: f32[16,128], index: 1, kind: input, shape index: {}]   ;;  %s222_s2 = inlined_call_operand.vmem [shape: f32[1,3,128], index: 2, kind: output, shape index: {}]  }
   0x1   :  { %8 = vsyncpa [#allocation8], 0  ;;  %s168_s9 = smov [#allocation5]   ;;  %s120_s13 = scalar_lea.hbm %s220_s0, 256 }
   0x2   :  { %s18_s10 = sshll.u32 %s168_s9, 4  ;;  %p121_p0 = scmp.ne.s32.totalorder %s220_s0, %s120_s13  ;;  %s19_s10 = int_to_ptr.vmem [resolvable:$true] %s18_s10 }
   0x3   :  { %p124_p1 = scmp.lt.u32.totalorder %s120_s13, %s220_s0 }
   0x5   :  { %p126_p2 = pnand %p124_p1, %p121_p0 }
   0x7   :  { %129 = shalt.err (!%p126_p2)
}
   0x8   :  { %s130_s18 = scalar_lea.vmem %s19_s10, 256  ;;  %p135_p4 = scmp.lt.s32.totalorder %s19_s10, %s19_s10 }
   0x9   :  { %p131_p3 = scmp.ne.s32.totalorder %s19_s10, %s130_s18  ;;  %p136_p5 = scmp.lt.s32.totalorder %s130_s18, %s130_s18 }
   0xb   :  { %p137_p6 = por %p136_p5, %p135_p4 }
   0xd   :  { %p138_p7 = pnand %p137_p6, %p131_p3 }
   0xf   :  { %141 = shalt.err (!%p138_p7)
}
  0x10   :  { %s169_s19 = smov 128   ;;  %s170_s20 = smov 8  }
  0x11   :  { %24 = dma.hbm_to_vmem [thread:$0]  %s220_s0, 256, %s19_s10, [#allocation6], %s169_s19, %s169_s19, %s170_s20  }
  0x12   :  { %s171_s23 = smov [#allocation7]   ;;  %s142_s27 = scalar_lea.hbm %s221_s1, 256 }
  0x13   :  { %s34_s24 = sshll.u32 %s171_s23, 4  ;;  %p143_p8 = scmp.ne.s32.totalorder %s221_s1, %s142_s27  ;;  %s35_s24 = int_to_ptr.vmem [resolvable:$true] %s34_s24 }
  0x14   :  { %p146_p9 = scmp.lt.u32.totalorder %s142_s27, %s221_s1 }
  0x16   :  { %p148_p10 = pnand %p146_p9, %p143_p8 }
  0x18   :  { %151 = shalt.err (!%p148_p10)
}
  0x19   :  { %s152_s4 = scalar_lea.vmem %s35_s24, 256  ;;  %p157_p12 = scmp.lt.s32.totalorder %s35_s24, %s35_s24 }
  0x1a   :  { %p153_p11 = scmp.ne.s32.totalorder %s35_s24, %s152_s4  ;;  %p158_p13 = scmp.lt.s32.totalorder %s152_s4, %s152_s4 }
  0x1c   :  { %p159_p0 = por %p158_p13, %p157_p12 }
  0x1e   :  { %p160_p1 = pnand %p159_p0, %p153_p11 }
  0x20   :  { %163 = shalt.err (!%p160_p1)
}
  0x21   :  { %40 = dma.hbm_to_vmem [thread:$0]  %s221_s1, 256, %s35_s24, [#allocation8], %s169_s19, %s169_s19, %s170_s20  }
  0x22   :  { %164 = dma.done.wait [#allocation6], 256  }
  0x23   :  { %165 = vsyncadd [#allocation6], 4294967040 }
  0x24   :  { %166 = dma.done.wait [#allocation8], 256  }
  0x25   :  { %167 = vsyncadd [#allocation8], 4294967040  ;;  %v58_v0 = vld [vmem:[#allocation5] sm:$0xff]  ;;  %v59_v1 = vld [vmem:[#allocation5 + $0x8] sm:$0xff] }
  0x26   :  { %v60_v2 = vld [vmem:[#allocation7] sm:$0xff]  ;;  %v61_v3 = vld [vmem:[#allocation7 + $0x8] sm:$0xff]  ;;  %v70_v6 = vmul.f32 %v58_v0, %v58_v0  ;;  %v71_v7 = vmul.f32 %v59_v1, %v59_v1 }
  0x27   :  { %v62_v4 = vmul.f32 %v60_v2, %v58_v0  ;;  %v66_v5 = vmul.f32 %v60_v2, %v60_v2  ;;  %v63_v8 = vmul.f32 %v61_v3, %v59_v1  ;;  %v67_v9 = vmul.f32 %v61_v3, %v61_v3 }
  0x28   :  { %v72_v10 = vadd.f32 %v71_v7, %v70_v6 }
  0x29   :  { %v64_v11 = vadd.f32 %v63_v8, %v62_v4  ;;  %v68_v12 = vadd.f32 %v67_v9, %v66_v5 }
  0x2a   :  { %v103_v13 = vrot.slane %v72_v10, 4 }
  0x2b   :  { %v87_v14 = vrot.slane %v64_v11, 4  ;;  %v95_v15 = vrot.slane %v68_v12, 4 }
  0x2c   :  { %v104_v16 = vadd.f32 %v103_v13, %v72_v10 }
  0x2d   :  { %v88_v17 = vadd.f32 %v87_v14, %v64_v11  ;;  %v96_v18 = vadd.f32 %v95_v15, %v68_v12 }
  0x2e   :  { %v105_v19 = vrot.slane %v104_v16, 2 }
  0x2f   :  { %v89_v20 = vrot.slane %v88_v17, 2  ;;  %v97_v21 = vrot.slane %v96_v18, 2 }
  0x30   :  { %v106_v22 = vadd.f32 %v105_v19, %v104_v16 }
  0x31   :  { %v90_v23 = vadd.f32 %v89_v20, %v88_v17  ;;  %v98_v24 = vadd.f32 %v97_v21, %v96_v18 }
  0x32   :  { %v107_v25 = vrot.slane %v106_v22, 1 }
  0x33   :  { %v91_v26 = vrot.slane %v90_v23, 1  ;;  %v99_v27 = vrot.slane %v98_v24, 1 }
  0x34   :  { %v108_v28 = vadd.f32 %v107_v25, %v106_v22 }
  0x35   :  { %v92_v29 = vadd.f32 %v91_v26, %v90_v23  ;;  %v100_v30 = vadd.f32 %v99_v27, %v98_v24 }
  0x36   :  { %109 = vst [vmem:[%s222_s2 + $0x2] sm:$0x1] %v108_v28 }
  0x37   :  { %93 = vst [vmem:[%s222_s2] sm:$0x1] %v92_v29  ;;  %101 = vst [vmem:[%s222_s2 + $0x1] sm:$0x1] %v100_v30 }
  0x38   :  { %114 = vsyncpa [#allocation6], 1 }
  0x39   :  { %115 = vsyncpa [#allocation8], 1 }

</bundles_post_ra>
